<compile_context>
chip_gen: v6e
topology: v6e:2x2x1
jax: 0.10.0
libtpu: 0.0.40
codegen_flags: <defaults>
</compile_context>

<pallas_src>
import functools

import jax
import jax.numpy as jnp
from jax.experimental import pallas as pl
from jax.experimental.pallas import tpu as pltpu


def _round_up(x, m):
    return (x + m - 1) // m * m


def hybrid_avg_kernel(x_ref, p_ref, o_ref, *, din, rows_a, lw):
    """Fused forward. p_ref row layout (all slices static & sublane-aligned):

      [0      : din    )  first-layer weights  [w1a | w2a | 0...]            (din, lw)
      [din    : din+1  )  first-layer bias row [b1a | b2a | 1 | 0...]
                          (the 1 at lane 2H becomes a constant-1 hidden lane that
                           carries the second-layer biases through the 2nd matmul)
      [rows_a : rows_a+lw) second-layer weights (lw, lw):
                          cols [0,Dout)      = 0.5*[w1b ; w2b]   -> combined
                          cols [Dout,2Dout)  = [w1b ; 0]         -> m1_out
                          cols [2Dout,3Dout) = [0 ; w2b]         -> m2_out
                          row  2H            = [0.5*(b1b+b2b) | b1b | b2b]
    """
    x = x_ref[...]
    # Layer 1 (both branches fused): h lanes [0,H)=m1 hidden, [H,2H)=m2 hidden,
    # lane 2H == 1 (bias carrier), remaining lanes == 0.
    h = jnp.dot(x, p_ref[0:din, :], preferred_element_type=jnp.float32)
    h = jnp.maximum(h + p_ref[din:din + 1, :], 0.0)
    # Layer 2 (both branches + average + output packing fused into one matmul).
    o_ref[...] = jnp.dot(
        h, p_ref[rows_a:rows_a + lw, :], preferred_element_type=jnp.float32
    ).astype(o_ref.dtype)


def pack_params(params, dtype=jnp.float32):
    """Pack the 8 Linear params of m1/m2 into ONE pre-padded (rows, lw) slab.

    Built once and reused across forward calls.
    """
    w1a, b1a, w1b, b1b, w2a, b2a, w2b, b2b = [jnp.asarray(p, dtype) for p in params]
    din, H = w1a.shape
    dout = w1b.shape[1]
    H2 = 2 * H

    lanes_h = _round_up(H2 + 1, 128)      # hidden lanes incl. the constant-1 lane
    lanes_o = _round_up(3 * dout, 128)    # packed [comb|o1|o2] lanes (lane-dense)
    lw = max(lanes_h, lanes_o)            # common slab lane width (128 here)
    rows_a = _round_up(din + 1, 8)        # first-layer region (weights + bias row)
    rows = rows_a + lw                    # second-layer region is (lw, lw)

    half = jnp.asarray(0.5, dtype)
    slab = jnp.zeros((rows, lw), dtype)
    # --- first layer ---
    slab = slab.at[:din, :H].set(w1a)
    slab = slab.at[:din, H:H2].set(w2a)
    slab = slab.at[din, :H].set(b1a.reshape(-1))
    slab = slab.at[din, H:H2].set(b2a.reshape(-1))
    slab = slab.at[din, H2].set(1.0)                      # constant-1 hidden lane
    # --- second layer: one matmul emits [combined | m1_out | m2_out] directly ---
    r2 = rows_a
    slab = slab.at[r2:r2 + H, 0:dout].set(half * w1b)
    slab = slab.at[r2 + H:r2 + H2, 0:dout].set(half * w2b)
    slab = slab.at[r2:r2 + H, dout:2 * dout].set(w1b)
    slab = slab.at[r2 + H:r2 + H2, 2 * dout:3 * dout].set(w2b)
    slab = slab.at[r2 + H2, 0:dout].set(half * (b1b + b2b).reshape(-1))
    slab = slab.at[r2 + H2, dout:2 * dout].set(b1b.reshape(-1))
    slab = slab.at[r2 + H2, 2 * dout:3 * dout].set(b2b.reshape(-1))

    meta = dict(din=int(din), dout=int(dout), rows_a=int(rows_a), lw=int(lw))
    return slab, meta


def hybrid_mlp_forward(x, slab, meta):
    """Returns (combined, m1_out, m2_out) == HybridMLP(m1, m2, 'average').forward(X)."""
    B, din = x.shape
    assert din == meta["din"], "input width does not match packed parameters"
    dout, rows_a, lw = meta["dout"], meta["rows_a"], meta["lw"]

    vmem = pl.BlockSpec(memory_space=pltpu.MemorySpace.VMEM)
    itemsize = jnp.dtype(slab.dtype).itemsize
    flops = 2 * B * (din * lw + lw * lw)
    bytes_accessed = itemsize * (x.size + slab.size + B * lw)

    out = pl.pallas_call(
        functools.partial(hybrid_avg_kernel, din=din, rows_a=rows_a, lw=lw),
        out_shape=jax.ShapeDtypeStruct((B, lw), jnp.float32),
        in_specs=[vmem, vmem],
        out_specs=vmem,
        cost_estimate=pl.CostEstimate(
            flops=flops, transcendentals=0, bytes_accessed=bytes_accessed),
    )(x, slab)

    # Kernel writes one lane-dense slab; these splits are free XLA slices outside it.
    combined = out[:, :dout]
    m1_out = out[:, dout:2 * dout]
    m2_out = out[:, 2 * dout:3 * dout]
    return combined, m1_out, m2_out


def _init_linear(key, d_in, d_out):
    """Deterministic PyTorch-Linear-like init: U(-1/sqrt(d_in), 1/sqrt(d_in))."""
    kw, kb = jax.random.split(key)
    bound = 1.0 / (d_in ** 0.5)
    w = jax.random.uniform(kw, (d_in, d_out), jnp.float32, -bound, bound)
    b = jax.random.uniform(kb, (1, d_out), jnp.float32, -bound, bound)
    return w, b


def _reference(x, params):
    w1a, b1a, w1b, b1b, w2a, b2a, w2b, b2b = params
    o1 = jnp.maximum(x @ w1a + b1a, 0.0) @ w1b + b1b
    o2 = jnp.maximum(x @ w2a + b2a, 0.0) @ w2b + b2b
    return (o1 + o2) / 2.0, o1, o2


if __name__ == "__main__":
    # Small shapes implied by the MLP forward: X is (batch, num_inputs)
    B, NUM_INPUTS, NUM_HIDDEN, NUM_OUTPUTS = 8, 16, 32, 8

    root = jax.random.PRNGKey(0)
    kx, k1a, k1b, k2a, k2b = jax.random.split(root, 5)

    x = jax.random.normal(kx, (B, NUM_INPUTS), jnp.float32)

    w1a, b1a = _init_linear(k1a, NUM_INPUTS, NUM_HIDDEN)   # m1 layer 1
    w1b, b1b = _init_linear(k1b, NUM_HIDDEN, NUM_OUTPUTS)  # m1 layer 2
    w2a, b2a = _init_linear(k2a, NUM_INPUTS, NUM_HIDDEN)   # m2 layer 1
    w2b, b2b = _init_linear(k2b, NUM_HIDDEN, NUM_OUTPUTS)  # m2 layer 2
    params = (w1a, b1a, w1b, b1b, w2a, b2a, w2b, b2b)

    slab, meta = pack_params(params)   # done ONCE; reused across forward calls

    combined, m1_out, m2_out = jax.block_until_ready(
        hybrid_mlp_forward(x, slab, meta))

    ref_combined, ref_o1, ref_o2 = _reference(x, params)
    assert jnp.allclose(combined, ref_combined, atol=1e-5, rtol=1e-5)
    assert jnp.allclose(m1_out, ref_o1, atol=1e-5, rtol=1e-5)
    assert jnp.allclose(m2_out, ref_o2, atol=1e-5, rtol=1e-5)

    # TODO(synk): 'alternating' (stateful step_count), 'weighted', 'gating', 'concat',
    # 'chain', 'stitch' variants depend on concrete m1/m2 submodule classes / extra
    # learned MLPs not provided; only the default 'average' combination is implemented.

    print("KERNEL_OK")
</pallas_src>

<mosaic_0001>
module attributes {stable_mosaic.version = 11 : i64} {
  func.func @hybrid_avg_kernel(%arg0: memref<8x16xf32, #tpu.memory_space<vmem>>, %arg1: memref<152x128xf32, #tpu.memory_space<vmem>>, %arg2: memref<8x128xf32, #tpu.memory_space<vmem>>) attributes {dimension_semantics = [], scalar_prefetch = 0 : i64, scratch_operands = 0 : i64, tpu.core_type = #tpu.core_type<tc>} {
    %c0 = arith.constant 0 : index
    %c0_0 = arith.constant 0 : index
    %0 = vector.load %arg0[%c0, %c0_0] : memref<8x16xf32, #tpu.memory_space<vmem>>, vector<8x16xf32>
    %c0_1 = arith.constant 0 : index
    %c0_2 = arith.constant 0 : index
    %1 = vector.load %arg1[%c0_1, %c0_2] : memref<152x128xf32, #tpu.memory_space<vmem>>, vector<16x128xf32>
    %cst = arith.constant dense<0.000000e+00> : vector<8x128xf32>
    %2 = tpu.matmul %0, %1, %cst {dimension_numbers = #tpu.dot_dimension_numbers<[1], [0], [0], [1], [0, 0, 1, 1], [], []>} : vector<8x16xf32>, vector<16x128xf32>, vector<8x128xf32> -> vector<8x128xf32>
    %c16 = arith.constant 16 : index
    %c0_3 = arith.constant 0 : index
    %3 = vector.load %arg1[%c16, %c0_3] : memref<152x128xf32, #tpu.memory_space<vmem>>, vector<1x128xf32>
    %4 = vector.broadcast %3 : vector<1x128xf32> to vector<8x128xf32>
    %5 = arith.addf %2, %4 : vector<8x128xf32>
    %cst_4 = arith.constant 0.000000e+00 : f32
    %6 = vector.broadcast %cst_4 : f32 to vector<8x128xf32>
    %7 = arith.maximumf %5, %6 : vector<8x128xf32>
    %c24 = arith.constant 24 : index
    %c0_5 = arith.constant 0 : index
    %8 = vector.load %arg1[%c24, %c0_5] : memref<152x128xf32, #tpu.memory_space<vmem>>, vector<128x128xf32>
    %cst_6 = arith.constant dense<0.000000e+00> : vector<8x128xf32>
    %9 = tpu.matmul %7, %8, %cst_6 {dimension_numbers = #tpu.dot_dimension_numbers<[1], [0], [0], [1], [0, 0, 1, 1], [], []>} : vector<8x128xf32>, vector<128x128xf32>, vector<8x128xf32> -> vector<8x128xf32>
    %c0_7 = arith.constant 0 : index
    %c0_8 = arith.constant 0 : index
    %10 = vector.load %arg2[%c0_7, %c0_8] : memref<8x128xf32, #tpu.memory_space<vmem>>, vector<8x128xf32>
    tpu.vector_store %arg2[%c0_7, %c0_8], %9 {strides = array<i32>} : memref<8x128xf32, #tpu.memory_space<vmem>>, vector<8x128xf32>,
    return
  }
}

</mosaic_0001>

<bundles_post_ra>
// kernel: tpu_custom_call.1
= control target key start
LH: loop header
LB: loop body
LE: loop exit
PB: predicated region body
PF: predicated region fallthrough
CT: control target
= control target key end

     0   :  { %7 = vsyncpa [#allocation3], 0  ;;  %s392_s0 = inlined_call_operand.hbm [shape: f32[8,16], index: 0, kind: input, shape index: {}]   ;;  %s393_s1 = inlined_call_operand.hbm [shape: f32[152,128], index: 1, kind: input, shape index: {}]   ;;  %s394_s2 = inlined_call_operand.hbm [shape: f32[8,128], index: 2, kind: output, shape index: {}]  }
   0x1   :  { %8 = vsyncpa [#allocation6], 0 }
   0x2   :  { %9 = vsyncpa [#allocation4], 0  ;;  %s361_s9 = smov [#allocation2]   ;;  %s362_s11 = smov [#allocation5]  }
   0x3   :  { %s16_s10 = sshll.u32 %s361_s9, 4  ;;  %s25_s12 = sshll.u32 %s362_s11, 4  ;;  %s17_s10 = int_to_ptr.vmem [resolvable:$true] %s16_s10  ;;  %s26_s12 = int_to_ptr.vmem [resolvable:$true] %s25_s12 }
   0x4   :  { %s303_s13 = scalar_lea.vmem %s17_s10, 128  ;;  %p308_p1 = scmp.lt.s32.totalorder %s17_s10, %s17_s10 }
   0x5   :  { %p304_p0 = scmp.ne.s32.totalorder %s17_s10, %s303_s13  ;;  %p309_p2 = scmp.lt.s32.totalorder %s303_s13, %s303_s13 }
   0x7   :  { %p310_p3 = por %p309_p2, %p308_p1 }
   0x9   :  { %p311_p4 = pnand %p310_p3, %p304_p0 }
   0xb   :  { %314 = shalt.err (!%p311_p4)
}
   0xc   :  { %19 = dma.hbm_to_vmem [thread:$0]  %s392_s0, 128, %s17_s10, [#allocation3]  }
   0xd   :  { %s323_s16 = scalar_lea.vmem %s26_s12, 2432  ;;  %p328_p6 = scmp.lt.s32.totalorder %s26_s12, %s26_s12 }
   0xe   :  { %p324_p5 = scmp.ne.s32.totalorder %s26_s12, %s323_s16  ;;  %p329_p7 = scmp.lt.s32.totalorder %s323_s16, %s323_s16 }
  0x10   :  { %p330_p8 = por %p329_p7, %p328_p6 }
  0x12   :  { %p331_p9 = pnand %p330_p8, %p324_p5 }
  0x14   :  { %334 = shalt.err (!%p331_p9)
}
  0x15   :  { %s363_s17 = smov 128   ;;  %s364_s18 = smov 8  }
  0x16   :  { %31 = dma.hbm_to_vmem [thread:$0]  %s393_s1, 2432, %s26_s12, [#allocation6], %s363_s17, %s363_s17, %s364_s18  }
  0x17   :  { %355 = dma.done.wait [#allocation3], 128  }
  0x18   :  { %356 = vsyncadd [#allocation3], 4294967168 }
  0x19   :  { %357 = dma.done.wait [#allocation6], 2432  }
  0x1a   :  { %358 = vsyncadd [#allocation6], 4294964864  ;;  %v365_v0 = vmov 0.0   ;;  %vm366_vm0 = vmmov 0   ;;  %v40_v1 = vld [vmem:[#allocation5 + $0x8] sm:$0xff]  ;;  %v39_v2 = vld [vmem:[#allocation5] sm:$0xff] }
  0x1b   :  { %246 = vmatprep.subr.mxu0 %v365_v0  ;;  %250 = vmatprep.mubr.msk.f32.mxu0 %vm366_vm0, %v365_v0  ;;  %v38_v3 = vld [vmem:[#allocation2] sm:$0xff]  ;;  %vm46_vm1 = vcmask 130048   ;;  %v136_v4 = vld [vmem:[#allocation5 + $0x90] sm:$0xff]  ;;  %v135_v5 = vld [vmem:[#allocation5 + $0x88] sm:$0xff]  ;;  %s367_s0 = smov [#allocation7]  }
  0x1c   :  { %253 = vmatprep.subr.mxu1 %v365_v0  ;;  %285 = vmatprep.mubr.msk.f32.mxu1 %vm366_vm0, %v365_v0  ;;  %v134_v6 = vld [vmem:[#allocation5 + $0x80] sm:$0xff]  ;;  %v133_v7 = vld [vmem:[#allocation5 + $0x78] sm:$0xff]  ;;  %v132_v8 = vld [vmem:[#allocation5 + $0x70] sm:$0xff]  ;;  %s214_s1 = sshll.u32 %s367_s0, 4  ;;  %s215_s1 = int_to_ptr.vmem [resolvable:$true] %s214_s1 }
  0x1d   :  { %247 = vmatpush3.msra.mxu0 %v40_v1  ;;  %254 = vmatpush3.msra.mxu1 %v136_v4  ;;  %v131_v9 = vld [vmem:[#allocation5 + $0x68] sm:$0xff]  ;;  %v130_v10 = vld [vmem:[#allocation5 + $0x60] sm:$0xff]  ;;  %v129_v11 = vld [vmem:[#allocation5 + $0x58] sm:$0xff]  ;;  %s335_s21 = scalar_lea.vmem %s215_s1, 128  ;;  %p340_p11 = scmp.lt.s32.totalorder %s215_s1, %s215_s1 }
  0x1e   :  { %248 = vmatprep.subr.mxu0 %v365_v0  ;;  %255 = vmatprep.subr.mxu1 %v365_v0  ;;  %v128_v12 = vld [vmem:[#allocation5 + $0x50] sm:$0xff]  ;;  %v127_v13 = vld [vmem:[#allocation5 + $0x48] sm:$0xff]  ;;  %v126_v14 = vld [vmem:[#allocation5 + $0x40] sm:$0xff]  ;;  %p336_p10 = scmp.ne.s32.totalorder %s215_s1, %s335_s21  ;;  %p341_p12 = scmp.lt.s32.totalorder %s335_s21, %s335_s21 }
  0x1f   :  { %249 = vmatpush3.msra.mxu0 %v39_v2  ;;  %256 = vmatpush3.msra.mxu1 %v135_v5  ;;  %v125_v15 = vld [vmem:[#allocation5 + $0x38] sm:$0xff]  ;;  %v124_v16 = vld [vmem:[#allocation5 + $0x30] sm:$0xff]  ;;  %v123_v17 = vld [vmem:[#allocation5 + $0x28] sm:$0xff] }
  0x20   :  { %251 = vmatmul.mubr.msk.f32.vlgmr.msra.gmra.mxu0 %vm46_vm1, %v38_v3  ;;  %257 = vmatprep.subr.mxu1 %v365_v0  ;;  %v122_v18 = vld [vmem:[#allocation5 + $0x20] sm:$0xff]  ;;  %v121_v19 = vld [vmem:[#allocation5 + $0x18] sm:$0xff]  ;;  %v224_v20 = vld [vmem:[#allocation5 + $0x10] ss:$0 sm:$0xff]  ;;  %p342_p13 = por %p341_p12, %p340_p11 }
  0x21   :  { %258 = vmatpush3.msra.mxu1 %v134_v6 }
  0x22   :  { %259 = vmatprep.subr.mxu1 %v365_v0  ;;  %p343_p0 = pnand %p342_p13, %p336_p10 }
  0x23   :  { %260 = vmatpush3.msra.mxu1 %v133_v7 }
  0x24   :  { %261 = vmatprep.subr.mxu1 %v365_v0 }
  0x25   :  { %262 = vmatpush3.msra.mxu1 %v132_v8 }
  0x26   :  { %263 = vmatprep.subr.mxu1 %v365_v0 }
  0x27   :  { %264 = vmatpush3.msra.mxu1 %v131_v9 }
  0x28   :  { %265 = vmatprep.subr.mxu1 %v365_v0 }
  0x29   :  { %266 = vmatpush3.msra.mxu1 %v130_v10 }
  0x2a   :  { %267 = vmatprep.subr.mxu1 %v365_v0 }
  0x2b   :  { %268 = vmatpush3.msra.mxu1 %v129_v11 }
  0x2c   :  { %269 = vmatprep.subr.mxu1 %v365_v0 }
  0x2d   :  { %270 = vmatpush3.msra.mxu1 %v128_v12 }
  0x2e   :  { %271 = vmatprep.subr.mxu1 %v365_v0 }
  0x2f   :  { %272 = vmatpush3.msra.mxu1 %v127_v13 }
  0x30   :  { %273 = vmatprep.subr.mxu1 %v365_v0 }
  0x31   :  { %274 = vmatpush3.msra.mxu1 %v126_v14 }
  0x32   :  { %275 = vmatprep.subr.mxu1 %v365_v0 }
  0x33   :  { %276 = vmatpush3.msra.mxu1 %v125_v15 }
  0x34   :  { %277 = vmatprep.subr.mxu1 %v365_v0 }
  0x35   :  { %278 = vmatpush3.msra.mxu1 %v124_v16 }
  0x36   :  { %279 = vmatprep.subr.mxu1 %v365_v0 }
  0x37   :  { %280 = vmatpush3.msra.mxu1 %v123_v17 }
  0x38   :  { %281 = vmatprep.subr.mxu1 %v365_v0 }
  0x39   :  { %282 = vmatpush3.msra.mxu1 %v122_v18 }
  0x3a   :  { %283 = vmatprep.subr.mxu1 %v365_v0 }
  0x3b   :  { %284 = vmatpush3.msra.mxu1 %v121_v19 }
  0xe0   :  { %v116_v21 = vpop.f32.mrf.mxu0 }
  0xe1   :  { %v117_v22 = vadd.f32 %v224_v20, %v116_v21 }
  0xe2   :  { %v252_v23 = vpop.f32.mrf.mxu0 }
  0xe3   :  { %v120_v24 = vmax.f32 %v117_v22, 0.0 }
  0xe5   :  { %286 = vmatmul.mubr.f32.vlgmr.msra.gmra.mxu1 %v120_v24 }
 0x1a5   :  { %v203_v25 = vpop.f32.mrf.mxu1 }
 0x1a6   :  { %207 = vst [vmem:[#allocation7] sm:$0xff] %v203_v25 }
 0x1a7   :  { %v287_v26 = vpop.f32.mrf.mxu1 }
 0x1a8   :  { %346 = shalt.err (!%p343_p0)
}
 0x1a9   :  { %217 = dma.vmem_to_hbm [thread:$0]  %s215_s1, 128, %s394_s2, [#allocation4]  }
 0x1aa   :  { %359 = dma.done.wait [#allocation4], 128  }
 0x1ab   :  { %360 = vsyncadd [#allocation4], 4294967168 }
 0x1ac   :  { %221 = vsyncpa [#allocation3], 1 }
 0x1ad   :  { %222 = vsyncpa [#allocation6], 1 }
 0x1ae   :  { %223 = vsyncpa [#allocation4], 1 }

</bundles_post_ra>
